<compile_context>
chip_gen: v5e
topology: v5e:2x2
jax: 0.10.0
libtpu: 0.0.40
codegen_flags: <defaults>
</compile_context>

<pallas_src>
import functools
import math

import jax
import jax.numpy as jnp
from jax.experimental import pallas as pl
from jax.experimental.pallas import tpu as pltpu

_LANE = 128
_SUBLANE = 8
# Per-tile VMEM working-set budget and scoped-VMEM limit.  48 MiB is below
# v7x's 64 MiB physical VMEM and above the 16/32 MiB default scoped limits of
# v5e/v6e (which have 128 MiB physical, so this is conservative there).
_VMEM_TILE_BUDGET = 40 * 1024 * 1024
_VMEM_LIMIT_BYTES = 48 * 1024 * 1024


def _round_up(x, m):
    return ((x + m - 1) // m) * m


@functools.lru_cache(maxsize=None)
def _single_buffered_supported():
    """True if BlockSpec(pipeline_mode=pl.Buffered(1)) lowers & runs here.

    Resident (constant index_map) weights don't need double buffering;
    Buffered(1) halves their VMEM footprint (matters most on v7x).  Probe once
    with a tiny copy kernel so an unsupported combination silently falls back
    to default pipelining instead of failing the real kernel.
    """
    def _copy(x_ref, o_ref):
        o_ref[...] = x_ref[...]

    try:
        spec = pl.BlockSpec((_SUBLANE, _LANE), lambda i: (0, 0),
                            pipeline_mode=pl.Buffered(1))
        out = pl.pallas_call(
            _copy,
            out_shape=jax.ShapeDtypeStruct((_SUBLANE, _LANE), jnp.float32),
            grid=(1,),
            in_specs=[spec],
            out_specs=pl.BlockSpec((_SUBLANE, _LANE), lambda i: (0, 0)),
        )(jnp.zeros((_SUBLANE, _LANE), jnp.float32))
        jax.block_until_ready(out)
        return True
    except Exception:
        return False


@functools.lru_cache(maxsize=None)
def _bf16_elementwise_ok():
    """bf16 VPU/EUP exists on v6e/v7x; v5e (and older) lack it -> keep f32."""
    try:
        kind = jax.devices()[0].device_kind.lower()
    except Exception:
        return False
    return ("v6" in kind) or ("v7" in kind)


# ----------------------------------------------------------------------------
# Pallas kernels
# ----------------------------------------------------------------------------
def _linear_actor_kernel(x_ref, w_ref, b_ref, o_ref):
    """Image-obs branch: o = x @ W + b (single Linear head).

    x tile (TB, feature_dim), W resident bf16 (feature_dim, N_pad), b resident
    f32 (1, N_pad).  MXU accumulation in f32; bf16 lane-padded writeback.
    """
    x = x_ref[...].astype(jnp.bfloat16)
    acc = jnp.dot(x, w_ref[...], preferred_element_type=jnp.float32)
    o_ref[...] = (acc + b_ref[...]).astype(o_ref.dtype)


def _mlp_actor_kernel(x_ref, w1_ref, b1_ref, w2_ref, b2_ref, w3_ref, b3_ref,
                      o_ref, *, act_dtype):
    """Vector-obs branch: Linear -> Tanh -> Linear -> Tanh -> Linear.

    MXU matmuls take bf16 operands with f32 accumulation.  Bias-add / tanh run
    in `act_dtype`: bf16 on v6e/v7x (bf16 VPU/EUP; halves intermediate traffic
    and drops two cast passes), f32 on v5e.  Final head lane-padded to 128.
    """
    x = x_ref[...].astype(jnp.bfloat16)
    a1 = jnp.dot(x, w1_ref[...], preferred_element_type=jnp.float32)
    h1 = jnp.tanh(a1.astype(act_dtype) + b1_ref[...].astype(act_dtype))
    a2 = jnp.dot(h1.astype(jnp.bfloat16), w2_ref[...],
                 preferred_element_type=jnp.float32)
    h2 = jnp.tanh(a2.astype(act_dtype) + b2_ref[...].astype(act_dtype))
    a3 = jnp.dot(h2.astype(jnp.bfloat16), w3_ref[...],
                 preferred_element_type=jnp.float32)
    o_ref[...] = (a3 + b3_ref[...]).astype(o_ref.dtype)


# ----------------------------------------------------------------------------
# Parameter init (deterministic, PyTorch nn.Linear-style bounds)
# ----------------------------------------------------------------------------
def _init_linear(key, in_features, out_features, in_pad=None, out_pad=None):
    """Returns (W[in_pad, out_pad] bf16, b[1, out_pad] f32).

    W is the transpose of PyTorch's (out, in).  Padded rows/columns are exact
    zeros so padded hidden/logit lanes stay zero.  Init bounds use the
    *logical* fan-in, matching nn.Linear.
    """
    kw, kb = jax.random.split(key)
    bound = 1.0 / math.sqrt(in_features)
    w = jax.random.uniform(kw, (in_features, out_features), jnp.float32, -bound, bound)
    b = jax.random.uniform(kb, (1, out_features), jnp.float32, -bound, bound)
    ip = in_features if in_pad is None else in_pad
    op = out_features if out_pad is None else out_pad
    w = jnp.pad(w, ((0, ip - in_features), (0, op - out_features)))
    b = jnp.pad(b, ((0, 0), (0, op - out_features)))
    return w.astype(jnp.bfloat16), b  # weights bf16, biases f32


# ----------------------------------------------------------------------------
# DiscreteActor wrapper
# ----------------------------------------------------------------------------
class DiscreteActorPallas:
    def __init__(self, obs_shape, action_dim, feature_dim, hidden_dim, key,
                 batch_tile=512):
        self.obs_shape = tuple(obs_shape)
        self.action_dim = action_dim
        self.feature_dim = feature_dim
        self.hidden_dim = hidden_dim
        self.is_image = len(self.obs_shape) > 1
        self.batch_tile = batch_tile
        # Lane-pad hidden & output dims so all matmul N (and K for layers 2/3)
        # are lane-dense and the output stores are unmasked `vst`.
        self.n_pad = _round_up(max(action_dim, 1), _LANE)
        self.hidden_pad = _round_up(max(hidden_dim, 1), _LANE)
        self._single_buffer_weights = _single_buffered_supported()
        self._act_dtype = jnp.bfloat16 if _bf16_elementwise_ok() else jnp.float32

        if self.is_image:
            self.params = _init_linear(key, feature_dim, action_dim,
                                       out_pad=self.n_pad)
        else:
            k1, k2, k3 = jax.random.split(key, 3)
            w1, b1 = _init_linear(k1, feature_dim, hidden_dim,
                                  out_pad=self.hidden_pad)
            w2, b2 = _init_linear(k2, hidden_dim, hidden_dim,
                                  in_pad=self.hidden_pad, out_pad=self.hidden_pad)
            w3, b3 = _init_linear(k3, hidden_dim, action_dim,
                                  in_pad=self.hidden_pad, out_pad=self.n_pad)
            self.params = (w1, b1, w2, b2, w3, b3)

    # -- tiling ---------------------------------------------------------------
    def _pick_batch_tile(self, batch, x_bytes):
        # Balanced tiles: e.g. batch=520 -> 2 tiles of 264 (<=8 wasted rows)
        # instead of padding to 1024.
        n_tiles = pl.cdiv(batch, self.batch_tile)
        # v7x has 2 TensorCores/chip; give the "parallel" batch axis >= 2 grid
        # steps whenever there's enough batch to split.
        if n_tiles < 2 and batch > _SUBLANE:
            n_tiles = 2
        tb = _round_up(pl.cdiv(batch, n_tiles), _SUBLANE)

        # Keep the per-step working set inside the VMEM budget (v7x: 64 MiB
        # physical): double-buffered x/out, resident weights (1 or 2 buffers),
        # plus intermediates for the MLP branch.
        param_bytes = sum(int(p.size) * p.dtype.itemsize for p in self.params)
        w_buffers = 1 if self._single_buffer_weights else 2

        def footprint(t):
            f = 2 * t * self.feature_dim * x_bytes        # x double buffer
            f += 2 * t * self.n_pad * 2                   # bf16 out double buffer
            f += w_buffers * param_bytes                  # resident weights/biases
            if not self.is_image:
                f += 3 * t * self.hidden_pad * 4          # h1/h2 + temps
            return f

        while tb > _SUBLANE and footprint(tb) > _VMEM_TILE_BUDGET:
            tb = _round_up(tb // 2, _SUBLANE)
        return tb

    # -- forward --------------------------------------------------------------
    @functools.partial(jax.jit, static_argnums=0)
    def __call__(self, obs):
        """obs: (batch, feature_dim) features (f32 or bf16) -> (batch, action_dim) f32.

        Feed bf16 features straight from the upstream encoder to halve the
        input HBM read; the kernel casts to bf16 for the MXU either way.
        """
        batch, feat = obs.shape
        assert feat == self.feature_dim

        tb = self._pick_batch_tile(batch, obs.dtype.itemsize)
        # No wrapper-side pad: Pallas masks out-of-bounds rows of the trailing
        # block on writeback; garbage rows in the last input block are harmless
        # because rows are independent.
        grid = (pl.cdiv(batch, tb),)

        x_spec = pl.BlockSpec((tb, feat), lambda i: (i, 0))
        out_spec = pl.BlockSpec((tb, self.n_pad), lambda i: (i, 0))
        # bf16 writeback: only action_dim of the 128 padded lanes are real, so
        # downcasting the store halves the dominant HBM write traffic.
        out_shape = jax.ShapeDtypeStruct((batch, self.n_pad), jnp.bfloat16)

        resident_kwargs = {}
        if self._single_buffer_weights:
            resident_kwargs["pipeline_mode"] = pl.Buffered(1)  # constant index -> 1 buffer
        in_specs = [x_spec] + [
            pl.BlockSpec(p.shape, lambda i: (0, 0), **resident_kwargs)
            for p in self.params
        ]

        if self.is_image:
            kernel = _linear_actor_kernel
        else:
            kernel = functools.partial(_mlp_actor_kernel, act_dtype=self._act_dtype)

        out_padded = pl.pallas_call(
            kernel,
            out_shape=out_shape,
            grid=grid,
            in_specs=in_specs,
            out_specs=out_spec,
            compiler_params=pltpu.CompilerParams(
                # Independent batch tiles: shard across v7x's 2 TensorCores.
                dimension_semantics=("parallel",),
                vmem_limit_bytes=_VMEM_LIMIT_BYTES,
            ),
        )(obs, *self.params)

        # Drop the zero-padded logit lanes; restore the f32 logits contract.
        return out_padded[:, : self.action_dim].astype(jnp.float32)

    # Pure-JAX f32 reference using the same stored (zero-padded) parameters.
    def reference(self, obs):
        obs = obs.astype(jnp.float32)
        if self.is_image:
            w, b = self.params
            out = obs @ w.astype(jnp.float32) + b
        else:
            w1, b1, w2, b2, w3, b3 = self.params
            h1 = jnp.tanh(obs @ w1.astype(jnp.float32) + b1)
            h2 = jnp.tanh(h1 @ w2.astype(jnp.float32) + b2)
            out = h2 @ w3.astype(jnp.float32) + b3
        return out[:, : self.action_dim]

    # get_policy_outputs == (forward,) in the PyTorch module
    def get_policy_outputs(self, obs):
        return (self(obs),)


# ----------------------------------------------------------------------------
# Main
# ----------------------------------------------------------------------------
if __name__ == "__main__":
    key = jax.random.PRNGKey(0)
    k_mlp, k_lin, k_obs, k_obs2 = jax.random.split(key, 4)

    batch = 2
    feature_dim = 32
    hidden_dim = 32
    action_dim = 6

    # The actor consumes encoded features (batch, feature_dim); obs_shape only
    # selects the architecture branch.
    obs = jax.random.normal(k_obs, (batch, feature_dim), jnp.float32)

    # Tolerance covers bf16 matmul operands and the bf16 logit writeback
    # (accumulation stays in f32).
    ATOL = RTOL = 5e-2

    # Branch 1: vector observations -> 3-layer MLP with Tanh.
    actor_mlp = DiscreteActorPallas(
        obs_shape=(feature_dim,), action_dim=action_dim,
        feature_dim=feature_dim, hidden_dim=hidden_dim, key=k_mlp)
    logits_mlp = jax.block_until_ready(actor_mlp(obs))
    assert logits_mlp.shape == (batch, action_dim)
    assert logits_mlp.dtype == jnp.float32
    assert jnp.allclose(logits_mlp, actor_mlp.reference(obs), atol=ATOL, rtol=RTOL)

    # Branch 2: image observations -> single Linear head.
    actor_lin = DiscreteActorPallas(
        obs_shape=(4, 16, 16), action_dim=action_dim,
        feature_dim=feature_dim, hidden_dim=hidden_dim, key=k_lin)
    logits_lin = jax.block_until_ready(actor_lin(obs))
    assert logits_lin.shape == (batch, action_dim)
    assert jnp.allclose(logits_lin, actor_lin.reference(obs), atol=ATOL, rtol=RTOL)

    # Ragged batch + bf16 features: exercises the pad-free cdiv grid (partial
    # trailing block, masked writeback) and the bf16-input fast path.
    batch2 = 20
    obs2 = jax.random.normal(k_obs2, (batch2, feature_dim), jnp.float32).astype(jnp.bfloat16)
    logits2 = jax.block_until_ready(actor_mlp(obs2))
    assert logits2.shape == (batch2, action_dim)
    assert jnp.allclose(logits2, actor_mlp.reference(obs2), atol=ATOL, rtol=RTOL)

    print("KERNEL_OK")
</pallas_src>

<mosaic_0001>
module attributes {stable_mosaic.version = 11 : i64} {
  func.func @_copy(%arg0: i32, %arg1: memref<8x128xf32, #tpu.memory_space<vmem>>, %arg2: memref<8x128xf32, #tpu.memory_space<vmem>>) attributes {dimension_semantics = [#tpu.dimension_semantics<arbitrary>], iteration_bounds = array<i64: 1>, scalar_prefetch = 0 : i64, scratch_operands = 0 : i64, tpu.core_type = #tpu.core_type<tc>, window_params = [{pipeline_mode = #tpu.pipeline_mode<synchronous>, transform_indices = @transform_0, window_bounds = array<i64: 8, 128>}, {pipeline_mode = #tpu.pipeline_mode<synchronous>, transform_indices = @transform_1, window_bounds = array<i64: 8, 128>}]} {
    %c0 = arith.constant 0 : index
    %c0_0 = arith.constant 0 : index
    %0 = vector.load %arg1[%c0, %c0_0] : memref<8x128xf32, #tpu.memory_space<vmem>>, vector<8x128xf32>
    %c0_1 = arith.constant 0 : index
    %c0_2 = arith.constant 0 : index
    %1 = vector.load %arg2[%c0_1, %c0_2] : memref<8x128xf32, #tpu.memory_space<vmem>>, vector<8x128xf32>
    tpu.vector_store %arg2[%c0_1, %c0_2], %0 {strides = array<i32>} : memref<8x128xf32, #tpu.memory_space<vmem>>, vector<8x128xf32>,
    return
  }
  func.func @transform_0(%arg0: i32) -> (i32, i32) {
    %c0_i32 = arith.constant 0 : i32
    %c0_i32_0 = arith.constant 0 : i32
    %c0_i32_1 = arith.constant 0 : i32
    return %c0_i32, %c0_i32_0 : i32, i32
  }
  func.func @transform_1(%arg0: i32) -> (i32, i32) {
    %c0_i32 = arith.constant 0 : i32
    %c0_i32_0 = arith.constant 0 : i32
    %c0_i32_1 = arith.constant 0 : i32
    return %c0_i32, %c0_i32_0 : i32, i32
  }
}

module attributes {stable_mosaic.version = 11 : i64} {
  func.func @_mlp_actor_kernel(%arg0: i32, %arg1: memref<8x32xf32, #tpu.memory_space<vmem>>, %arg2: memref<32x128xbf16, #tpu.memory_space<vmem>>, %arg3: memref<1x128xf32, #tpu.memory_space<vmem>>, %arg4: memref<128x128xbf16, #tpu.memory_space<vmem>>, %arg5: memref<1x128xf32, #tpu.memory_space<vmem>>, %arg6: memref<128x128xbf16, #tpu.memory_space<vmem>>, %arg7: memref<1x128xf32, #tpu.memory_space<vmem>>, %arg8: memref<8x128xbf16, #tpu.memory_space<vmem>>) attributes {dimension_semantics = [#tpu.dimension_semantics<parallel>], iteration_bounds = array<i64: 1>, scalar_prefetch = 0 : i64, scratch_operands = 0 : i64, tpu.core_type = #tpu.core_type<tc>, window_params = [{transform_indices = @transform_0, window_bounds = array<i64: 8, 32>}, {pipeline_mode = #tpu.pipeline_mode<synchronous>, transform_indices = @transform_1, window_bounds = array<i64: 32, 128>}, {pipeline_mode = #tpu.pipeline_mode<synchronous>, transform_indices = @transform_2, window_bounds = array<i64: 1, 128>}, {pipeline_mode = #tpu.pipeline_mode<synchronous>, transform_indices = @transform_3, window_bounds = array<i64: 128, 128>}, {pipeline_mode = #tpu.pipeline_mode<synchronous>, transform_indices = @transform_4, window_bounds = array<i64: 1, 128>}, {pipeline_mode = #tpu.pipeline_mode<synchronous>, transform_indices = @transform_5, window_bounds = array<i64: 128, 128>}, {pipeline_mode = #tpu.pipeline_mode<synchronous>, transform_indices = @transform_6, window_bounds = array<i64: 1, 128>}, {transform_indices = @transform_7, window_bounds = array<i64: 8, 128>}]} {
    %c0 = arith.constant 0 : index
    %c0_0 = arith.constant 0 : index
    %0 = vector.load %arg1[%c0, %c0_0] : memref<8x32xf32, #tpu.memory_space<vmem>>, vector<8x32xf32>
    %1 = arith.truncf %0 : vector<8x32xf32> to vector<8x32xbf16>
    %c0_1 = arith.constant 0 : index
    %c0_2 = arith.constant 0 : index
    %2 = vector.load %arg2[%c0_1, %c0_2] : memref<32x128xbf16, #tpu.memory_space<vmem>>, vector<32x128xbf16>
    %cst = arith.constant dense<0.000000e+00> : vector<8x128xf32>
    %3 = tpu.matmul %1, %2, %cst {dimension_numbers = #tpu.dot_dimension_numbers<[1], [0], [0], [1], [0, 0, 1, 1], [], []>} : vector<8x32xbf16>, vector<32x128xbf16>, vector<8x128xf32> -> vector<8x128xf32>
    %c0_3 = arith.constant 0 : index
    %c0_4 = arith.constant 0 : index
    %4 = vector.load %arg3[%c0_3, %c0_4] : memref<1x128xf32, #tpu.memory_space<vmem>>, vector<1x128xf32>
    %5 = vector.broadcast %4 : vector<1x128xf32> to vector<8x128xf32>
    %6 = arith.addf %3, %5 : vector<8x128xf32>
    %7 = math.tanh %6 : vector<8x128xf32>
    %8 = arith.truncf %7 : vector<8x128xf32> to vector<8x128xbf16>
    %c0_5 = arith.constant 0 : index
    %c0_6 = arith.constant 0 : index
    %9 = vector.load %arg4[%c0_5, %c0_6] : memref<128x128xbf16, #tpu.memory_space<vmem>>, vector<128x128xbf16>
    %cst_7 = arith.constant dense<0.000000e+00> : vector<8x128xf32>
    %10 = tpu.matmul %8, %9, %cst_7 {dimension_numbers = #tpu.dot_dimension_numbers<[1], [0], [0], [1], [0, 0, 1, 1], [], []>} : vector<8x128xbf16>, vector<128x128xbf16>, vector<8x128xf32> -> vector<8x128xf32>
    %c0_8 = arith.constant 0 : index
    %c0_9 = arith.constant 0 : index
    %11 = vector.load %arg5[%c0_8, %c0_9] : memref<1x128xf32, #tpu.memory_space<vmem>>, vector<1x128xf32>
    %12 = vector.broadcast %11 : vector<1x128xf32> to vector<8x128xf32>
    %13 = arith.addf %10, %12 : vector<8x128xf32>
    %14 = math.tanh %13 : vector<8x128xf32>
    %15 = arith.truncf %14 : vector<8x128xf32> to vector<8x128xbf16>
    %c0_10 = arith.constant 0 : index
    %c0_11 = arith.constant 0 : index
    %16 = vector.load %arg6[%c0_10, %c0_11] : memref<128x128xbf16, #tpu.memory_space<vmem>>, vector<128x128xbf16>
    %cst_12 = arith.constant dense<0.000000e+00> : vector<8x128xf32>
    %17 = tpu.matmul %15, %16, %cst_12 {dimension_numbers = #tpu.dot_dimension_numbers<[1], [0], [0], [1], [0, 0, 1, 1], [], []>} : vector<8x128xbf16>, vector<128x128xbf16>, vector<8x128xf32> -> vector<8x128xf32>
    %c0_13 = arith.constant 0 : index
    %c0_14 = arith.constant 0 : index
    %18 = vector.load %arg7[%c0_13, %c0_14] : memref<1x128xf32, #tpu.memory_space<vmem>>, vector<1x128xf32>
    %19 = vector.broadcast %18 : vector<1x128xf32> to vector<8x128xf32>
    %20 = arith.addf %17, %19 : vector<8x128xf32>
    %21 = arith.truncf %20 : vector<8x128xf32> to vector<8x128xbf16>
    %c0_15 = arith.constant 0 : index
    %c0_16 = arith.constant 0 : index
    %22 = vector.load %arg8[%c0_15, %c0_16] : memref<8x128xbf16, #tpu.memory_space<vmem>>, vector<8x128xbf16>
    tpu.vector_store %arg8[%c0_15, %c0_16], %21 {strides = array<i32>} : memref<8x128xbf16, #tpu.memory_space<vmem>>, vector<8x128xbf16>,
    return
  }
  func.func @transform_0(%arg0: i32) -> (i32, i32) {
    %c0_i32 = arith.constant 0 : i32
    %c0_i32_0 = arith.constant 0 : i32
    return %arg0, %c0_i32 : i32, i32
  }
  func.func @transform_1(%arg0: i32) -> (i32, i32) {
    %c0_i32 = arith.constant 0 : i32
    %c0_i32_0 = arith.constant 0 : i32
    %c0_i32_1 = arith.constant 0 : i32
    return %c0_i32, %c0_i32_0 : i32, i32
  }
  func.func @transform_2(%arg0: i32) -> (i32, i32) {
    %c0_i32 = arith.constant 0 : i32
    %c0_i32_0 = arith.constant 0 : i32
    %c0_i32_1 = arith.constant 0 : i32
    return %c0_i32, %c0_i32_0 : i32, i32
  }
  func.func @transform_3(%arg0: i32) -> (i32, i32) {
    %c0_i32 = arith.constant 0 : i32
    %c0_i32_0 = arith.constant 0 : i32
    %c0_i32_1 = arith.constant 0 : i32
    return %c0_i32, %c0_i32_0 : i32, i32
  }
  func.func @transform_4(%arg0: i32) -> (i32, i32) {
    %c0_i32 = arith.constant 0 : i32
    %c0_i32_0 = arith.constant 0 : i32
    %c0_i32_1 = arith.constant 0 : i32
    return %c0_i32, %c0_i32_0 : i32, i32
  }
  func.func @transform_5(%arg0: i32) -> (i32, i32) {
    %c0_i32 = arith.constant 0 : i32
    %c0_i32_0 = arith.constant 0 : i32
    %c0_i32_1 = arith.constant 0 : i32
    return %c0_i32, %c0_i32_0 : i32, i32
  }
  func.func @transform_6(%arg0: i32) -> (i32, i32) {
    %c0_i32 = arith.constant 0 : i32
    %c0_i32_0 = arith.constant 0 : i32
    %c0_i32_1 = arith.constant 0 : i32
    return %c0_i32, %c0_i32_0 : i32, i32
  }
  func.func @transform_7(%arg0: i32) -> (i32, i32) {
    %c0_i32 = arith.constant 0 : i32
    %c0_i32_0 = arith.constant 0 : i32
    return %arg0, %c0_i32 : i32, i32
  }
}

</mosaic_0001>

<bundles_post_ra>
// kernel: tpu_custom_call.1
= control target key start
LH: loop header
LB: loop body
LE: loop exit
PB: predicated region body
PF: predicated region fallthrough
CT: control target
= control target key end

     0   :  { %6 = vsyncpa [#allocation3], 0  ;;  %s114_s0 = inlined_call_operand.hbm [shape: f32[8,128], index: 0, kind: input, shape index: {}]   ;;  %s115_s1 = inlined_call_operand.hbm [shape: f32[8,128], index: 1, kind: output, shape index: {}]  }
   0x1   :  { %7 = vsyncpa [#allocation4], 0  ;;  %s13_s8 = sshll.u32 %s114_s0, 4  ;;  %s96_s9 = smov [#allocation2]   ;;  %s14_s8 = int_to_ptr.hbm [resolvable:$true] %s13_s8 }
   0x2   :  { %s15_s10 = sshll.u32 %s96_s9, 4  ;;  %s16_s10 = int_to_ptr.vmem [resolvable:$true] %s15_s10 }
   0x3   :  { %18 = dma.hbm_to_vmem [thread:$0]  %s14_s8, 128, %s16_s10, [#allocation3]  }
   0x4   :  { %92 = dma.done.wait [#allocation3], 128  }
   0x5   :  { %93 = vsyncadd [#allocation3], 4294967168  ;;  %s97_s11 = smov [#allocation5]   ;;  %s32_s15 = sshll.u32 %s115_s1, 4  ;;  %v23_v0 = vld [vmem:[#allocation2] sm:$0xff]  ;;  %s33_s15 = int_to_ptr.hbm [resolvable:$true] %s32_s15 }
   0x6   :  { %s30_s12 = sshll.u32 %s97_s11, 4  ;;  %24 = vst [vmem:[#allocation5] sm:$0xff] %v23_v0  ;;  %s31_s12 = int_to_ptr.vmem [resolvable:$true] %s30_s12 }
   0x7   :  { %35 = dma.vmem_to_hbm [thread:$0]  %s31_s12, 128, %s33_s15, [#allocation4]  }
   0x8   :  { %94 = dma.done.wait [#allocation4], 128  }
   0x9   :  { %95 = vsyncadd [#allocation4], 4294967168 }
   0xa   :  { %40 = vsyncpa [#allocation3], 1 }
   0xb   :  { %41 = vsyncpa [#allocation4], 1 }

// kernel: a_call__.1
= control target key start
LH: loop header
LB: loop body
LE: loop exit
PB: predicated region body
PF: predicated region fallthrough
CT: control target
= control target key end

     0   :  { %12 = vsyncpa [#allocation3], 0  ;;  %s694_s0 = inlined_call_operand.hbm [shape: f32[2,32], index: 0, kind: input, shape index: {}]   ;;  %s695_s1 = inlined_call_operand.hbm [shape: bf16[32,128], index: 1, kind: input, shape index: {}]   ;;  %s696_s2 = inlined_call_operand.hbm [shape: f32[1,128], index: 2, kind: input, shape index: {}]   ;;  %s697_s3 = inlined_call_operand.hbm [shape: bf16[128,128], index: 3, kind: input, shape index: {}]   ;;  %s698_s4 = inlined_call_operand.vmem [shape: f32[1,128], index: 4, kind: input, shape index: {}]   ;;  %s699_s5 = inlined_call_operand.hbm [shape: bf16[128,128], index: 5, kind: input, shape index: {}]   ;;  %s700_s6 = inlined_call_operand.vmem [shape: f32[1,128], index: 6, kind: input, shape index: {}]   ;;  %s701_s7 = inlined_call_operand.vmem [shape: bf16[2,128], index: 7, kind: output, shape index: {}]  }
   0x1   :  { %13 = vsyncpa [#allocation5], 0 }
   0x2   :  { %14 = vsyncpa [#allocation8], 0  ;;  %s32_s26 = sshll.u32 %s695_s1, 4  ;;  %s33_s26 = int_to_ptr.hbm [resolvable:$true] %s32_s26 }
   0x3   :  { %18 = vsyncadd [#allocation3], 96  ;;  %s612_s27 = smov [#allocation4]   ;;  %s56_s8 = sshll.u32 %s697_s3, 4  ;;  %s57_s8 = int_to_ptr.hbm [resolvable:$true] %s56_s8 }
   0x4   :  { %s34_s28 = sshll.u32 %s612_s27, 4  ;;  %s613_s9 = smov 64   ;;  %s35_s28 = int_to_ptr.vmem [resolvable:$true] %s34_s28 }
   0x5   :  { %s614_s10 = smov 4   ;;  %s615_s11 = smov [#allocation7]  }
   0x6   :  { %40 = dma.hbm_to_vmem [thread:$0]  %s33_s26, 256, %s35_s28, [#allocation5], %s613_s9, %s613_s9, %s614_s10  }
   0x7   :  { %s58_s12 = sshll.u32 %s615_s11, 4  ;;  %s19_s14 = sshll.u32 %s694_s0, 4  ;;  %s59_s12 = int_to_ptr.vmem [resolvable:$true] %s58_s12  ;;  %s20_s14 = int_to_ptr.hbm [resolvable:$true] %s19_s14 }
   0x8   :  { %64 = dma.hbm_to_vmem [thread:$0]  %s57_s8, 1024, %s59_s12, [#allocation8], %s613_s9, %s613_s9, %s614_s10  }
   0x9   :  { %s616_s3 = smov [#allocation2]   ;;  %s46_s18 = sshll.u32 %s696_s2, 4  ;;  %s47_s18 = int_to_ptr.hbm [resolvable:$true] %s46_s18 }
   0xa   :  { %s21_s15 = sshll.u32 %s616_s3, 4  ;;  %s617_s19 = smov 32   ;;  %s22_s15 = int_to_ptr.vmem [resolvable:$true] %s21_s15 }
   0xb   :  { %s618_s20 = smov 2   ;;  %s619_s21 = smov [#allocation6]  }
   0xc   :  { %27 = dma.hbm_to_vmem [thread:$0]  %s20_s14, 32, %s22_s15, [#allocation3], %s617_s19, %s617_s19, %s618_s20  }
   0xd   :  { %s48_s22 = sshll.u32 %s619_s21, 4  ;;  %s71_s24 = sshll.u32 %s699_s5, 4  ;;  %s49_s22 = int_to_ptr.vmem [resolvable:$true] %s48_s22  ;;  %s72_s24 = int_to_ptr.hbm [resolvable:$true] %s71_s24 }
   0xe   :  { %51 = dma.hbm_to_vmem [thread:$0]  %s47_s18, 16, %s49_s22, [#allocation5]  }
   0xf   :  { %s620_s25 = smov [#allocation9]  }
  0x10   :  { %s73_s26 = sshll.u32 %s620_s25, 4  ;;  %s74_s26 = int_to_ptr.vmem [resolvable:$true] %s73_s26 }
  0x11   :  { %79 = dma.hbm_to_vmem [thread:$0]  %s72_s24, 1024, %s74_s26, [#allocation8], %s613_s9, %s613_s9, %s614_s10  }
  0x12   :  { %606 = dma.done.wait [#allocation3], 128  }
  0x13   :  { %607 = vsyncadd [#allocation3], 4294967168 }
  0x14   :  { %608 = dma.done.wait [#allocation5], 272  }
  0x15   :  { %609 = vsyncadd [#allocation5], 4294967024 }
  0x16   :  { %610 = dma.done.wait [#allocation8], 2048  }
  0x17   :  { %611 = vsyncadd [#allocation8], 4294965248  ;;  %v453_v0 = vld [vmem:[#allocation4 + $0x8] sm:$0xff]  ;;  %v452_v2 = vld [vmem:[#allocation4] sm:$0xff]  ;;  %vm125_vm0 = vcmask 261120   ;;  %vm311_vm1 = vcmask 1040384  }
  0x18   :  { %v461_v1 = vld [vmem:[#allocation7 + $0x38] sm:$0xff]  ;;  %135 = vmatpush.bf16.msra.mxu0 %v453_v0  ;;  %v103_v3 = vld [vmem:[#allocation2] sm:$0xff]  ;;  %v460_v4 = vld [vmem:[#allocation7 + $0x30] sm:$0xff] }
  0x19   :  { %212 = vmatpush.bf16.msra.mxu1 %v461_v1  ;;  %v104_v5 = vpack.c.bf16 %v103_v3, %v103_v3  ;;  %v459_v6 = vld [vmem:[#allocation7 + $0x28] sm:$0xff]  ;;  %v458_v7 = vld [vmem:[#allocation7 + $0x20] sm:$0xff]  ;;  %v457_v8 = vld [vmem:[#allocation7 + $0x18] sm:$0xff] }
  0x1a   :  { %v456_v9 = vld [vmem:[#allocation7 + $0x10] sm:$0xff]  ;;  %v455_v10 = vld [vmem:[#allocation7 + $0x8] sm:$0xff]  ;;  %v454_v11 = vld [vmem:[#allocation7] sm:$0xff] }
  0x1b   :  { %v469_v12 = vld [vmem:[#allocation9 + $0x38] sm:$0xff]  ;;  %v468_v13 = vld [vmem:[#allocation9 + $0x30] sm:$0xff]  ;;  %v467_v14 = vld [vmem:[#allocation9 + $0x28] sm:$0xff] }
  0x1c   :  { %136 = vmatpush.bf16.msra.mxu0 %v452_v2  ;;  %295 = vmatpush.bf16.msra.mxu2 %v469_v12  ;;  %v466_v15 = vld [vmem:[#allocation9 + $0x20] sm:$0xff]  ;;  %v465_v16 = vld [vmem:[#allocation9 + $0x18] sm:$0xff]  ;;  %v464_v23 = vld [vmem:[#allocation9 + $0x10] sm:$0xff] }
  0x1d   :  { %213 = vmatpush.bf16.msra.mxu1 %v460_v4  ;;  %v479_v17 = vld [vmem:[#allocation6] ss:$0 sm:$0xff]  ;;  %v463_v24 = vld [vmem:[#allocation9 + $0x8] sm:$0xff]  ;;  %v462_v25 = vld [vmem:[#allocation9] sm:$0xff] }
  0x1e   :  { %v480_v26 = vld [vmem:[%s698_s4] ss:$0 sm:$0xff] }
  0x1f   :  { %387 = vmatmul.msk.bf16.vlgmr.msra.gmra.mxu0 %vm125_vm0, %v104_v5  ;;  %v481_v32 = vld [vmem:[%s700_s6] ss:$0 sm:$0xff] }
  0x20   :  { %296 = vmatpush.bf16.msra.mxu2 %v468_v13 }
  0x21   :  { %214 = vmatpush.bf16.msra.mxu1 %v459_v6 }
  0x24   :  { %297 = vmatpush.bf16.msra.mxu2 %v467_v14 }
  0x25   :  { %215 = vmatpush.bf16.msra.mxu1 %v458_v7 }
  0x28   :  { %298 = vmatpush.bf16.msra.mxu2 %v466_v15 }
  0x29   :  { %216 = vmatpush.bf16.msra.mxu1 %v457_v8 }
  0x2c   :  { %299 = vmatpush.bf16.msra.mxu2 %v465_v16 }
  0x2d   :  { %217 = vmatpush.bf16.msra.mxu1 %v456_v9 }
  0x30   :  { %300 = vmatpush.bf16.msra.mxu2 %v464_v23 }
  0x31   :  { %218 = vmatpush.bf16.msra.mxu1 %v455_v10 }
  0x34   :  { %301 = vmatpush.bf16.msra.mxu2 %v463_v24 }
  0x35   :  { %219 = vmatpush.bf16.msra.mxu1 %v454_v11 }
  0x38   :  { %302 = vmatpush.bf16.msra.mxu2 %v462_v25 }
  0x9c   :  { %v138_v18 = vpop.f32.mrf.mxu0 }
  0x9d   :  { %v139_v19 = vadd.f32 %v479_v17, %v138_v18 }
  0x9f   :  { %482 = vtanh.f32 %v139_v19 }
  0xa4   :  { %v140_v20 = vpop.f32.mrf.mxu0 }
  0xa5   :  { %v483_v21 = vpop.eup %482 }
  0xa6   :  { %v143_v22 = vpack.c.bf16 %v483_v21, %v483_v21 }
  0xa8   :  { %220 = vmatmul.bf16.vlgmr.msra.gmra.mxu1 %v143_v22 }
 0x125   :  { %v221_v27 = vpop.f32.mrf.mxu1 }
 0x126   :  { %v222_v28 = vadd.f32 %v480_v26, %v221_v27 }
 0x128   :  { %484 = vtanh.f32 %v222_v28 }
 0x12d   :  { %v223_v29 = vpop.f32.mrf.mxu1 }
 0x12e   :  { %v485_v30 = vpop.eup %484 }
 0x12f   :  { %v226_v31 = vpack.c.bf16 %v485_v30, %v485_v30 }
 0x131   :  { %303 = vmatmul.bf16.vlgmr.msra.gmra.mxu2 %v226_v31 }
 0x1b4   :  { %v304_v33 = vpop.f32.mrf.mxu2 }
 0x1b5   :  { %v305_v34 = vadd.f32 %v481_v32, %v304_v33 }
 0x1b7   :  { %v308_v35 = vpack.c.bf16 %v305_v34, %v305_v34 }
 0x1b9   :  { %v310_v36 = vrot.slane %v308_v35, 3 }
 0x1bb   :  { %v314_v37 = vsel %vm311_vm1, %v308_v35, %v310_v36 }
 0x1bc   :  { %331 = vst [vmem:[#allocation10] sm:$0x1] %v314_v37  ;;  %v306_v38 = vpop.f32.mrf.mxu2 }
 0x1c3   :  { %v353_v39 = vld [vmem:[#allocation10] sm:$0x1] }
 0x1c4   :  { %354 = vst [vmem:[%s701_s7] sm:$0x1] %v353_v39 }
 0x1c5   :  { %372 = vsyncpa [#allocation3], 1 }
 0x1c6   :  { %373 = vsyncpa [#allocation5], 1 }
 0x1c7   :  { %374 = vsyncpa [#allocation8], 1 }

</bundles_post_ra>
